<compile_context>
chip_gen: v7x
topology: tpu7x:2x2x1
jax: 0.10.0
libtpu: 0.0.40
codegen_flags: <defaults>
</compile_context>

<pallas_src>
import jax
import jax.numpy as jnp
from jax import lax
from jax.experimental import pallas as pl
from jax.experimental.pallas import tpu as pltpu

LANE = 128


def resblock_kernel(x_ref, s1_ref, b1_ref, w1_ref, s2_ref, b2_ref, w2d_ref,
                    bd_ref, o_ref):
    TB, L, Cin = x_ref.shape
    Cout = o_ref.shape[-1]
    rows = TB * L

    # Flatten batch into the matmul row dimension (L % 8 == 0 -> layout-trivial).
    x = x_ref[...].reshape(rows, Cin)

    # Row position inside its batch element -> halo masks (computed once, reused
    # by both convs; pos==0 / pos==L-1 rows get a zero halo, which also blocks
    # cross-batch-element leakage through the flattened row axis).
    pos = lax.broadcasted_iota(jnp.int32, (rows, 1), 0) % L
    has_prev = pos > 0            # row has a valid l-1 neighbour in the same batch element
    has_next = pos < (L - 1)      # row has a valid l+1 neighbour in the same batch element

    def taps3(h):
        # h: (rows, C) -> (rows, 3C) with taps stacked [l-1, l, l+1].
        # Row shifts run on the XLU (roll) + VPU (mask); lane concat is layout-cheap
        # because C is a multiple of 128.
        hm = jnp.where(has_prev, pltpu.roll(h, 1, 0), 0.0)           # h[l-1], zero halo
        hp = jnp.where(has_next, pltpu.roll(h, rows - 1, 0), 0.0)    # h[l+1], zero halo
        return jnp.concatenate([hm, h, hp], axis=-1)

    # bn1 -> relu1 -> conv1  (single K=3*Cin matmul)
    h = jnp.maximum(x * s1_ref[...] + b1_ref[...], 0.0)
    y = jnp.dot(taps3(h), w1_ref[...], preferred_element_type=jnp.float32)

    # bn2 -> relu2 -> [conv2 + downsample 1x1] fused into one K=3*Cout+Cin matmul,
    # BN shift of the downsample added afterwards (scale already folded into Wd).
    h2 = jnp.maximum(y * s2_ref[...] + b2_ref[...], 0.0)
    h2x = jnp.concatenate([taps3(h2), x], axis=-1)                   # (rows, 3*Cout + Cin)
    o = jnp.dot(h2x, w2d_ref[...], preferred_element_type=jnp.float32) + bd_ref[...]
    o_ref[...] = o.reshape(TB, L, Cout)


def _round_up(v, m):
    return (v + m - 1) // m * m


def _pad_last(a, n):
    p = n - a.shape[-1]
    if p == 0:
        return a
    return jnp.pad(a, [(0, 0)] * (a.ndim - 1) + [(0, p)])


def _pick_block_batch(n, l, cip, cop):
    # Rough per-batch-element live f32 intermediates (x/h, h3, y/h2, [h2 taps, x], out);
    # stay well under the scoped-VMEM default (also safe on v7x's 64 MiB VMEM).
    per_elem = 4 * l * (6 * cip + 6 * cop)
    budget = 8 << 20
    tb = max(1, min(n, budget // max(per_elem, 1)))
    if n >= 2:                     # keep >= 2 parallel grid steps so both v7x TCs get work
        tb = min(tb, n // 2)
    while n % tb:
        tb -= 1
    return max(tb, 1)


def resblock_forward_nlc(x_nlc, params, *, block_batch=None):
    """Channels-last ResBlock forward. x_nlc: (N, L, Cin) f32 -> (N, L, Cout) f32."""
    s1, b1, w1, s2, b2, w2, wd, sd, bd = params
    N, L, Cin = x_nlc.shape
    Cout = w1.shape[2]
    assert L % 8 == 0, "L must be a multiple of 8"

    Cip = _round_up(Cin, LANE)
    Cop = _round_up(Cout, LANE)

    # ---- parameter / input prep (pure algebra; no-ops when channels are lane-aligned) ----
    xp = _pad_last(x_nlc.astype(jnp.float32), Cip)
    s1p = _pad_last(s1.astype(jnp.float32), Cip)
    b1p = _pad_last(b1.astype(jnp.float32), Cip)
    s2p = _pad_last(s2.astype(jnp.float32), Cop)
    b2p = _pad_last(b2.astype(jnp.float32), Cop)
    # conv weights (3, Cin, Cout) -> zero-pad -> fused-tap layout (3*Cin_p, Cout_p)
    w1p = jnp.pad(w1.astype(jnp.float32),
                  ((0, 0), (0, Cip - Cin), (0, Cop - Cout))).reshape(3 * Cip, Cop)
    w2p = jnp.pad(w2.astype(jnp.float32),
                  ((0, 0), (0, Cop - Cout), (0, Cop - Cout))).reshape(3 * Cop, Cop)
    # downsample: fold the BN scale into the 1x1 weight (no nonlinearity on this path)
    wdp = jnp.pad((wd * sd).astype(jnp.float32), ((0, Cip - Cin), (0, Cop - Cout)))
    # fuse conv2 + downsample into a single (3*Cop + Cip, Cop) weight
    w2dp = jnp.concatenate([w2p, wdp], axis=0)
    bdp = _pad_last(bd.astype(jnp.float32), Cop)

    TB = block_batch if block_batch is not None else _pick_block_batch(N, L, Cip, Cop)
    assert N % TB == 0
    grid = (N // TB,)

    # NOTE: parameter operands have constant index_maps (fetched once, not re-DMA'd
    # per grid step); if VMEM gets tight at large channel counts they can be
    # single-buffered via pipeline_mode — not needed here.
    out = pl.pallas_call(
        resblock_kernel,
        out_shape=jax.ShapeDtypeStruct((N, L, Cop), jnp.float32),
        grid=grid,
        in_specs=[
            pl.BlockSpec((TB, L, Cip), lambda n: (n, 0, 0)),          # x
            pl.BlockSpec((1, Cip), lambda n: (0, 0)),                 # bn1 scale
            pl.BlockSpec((1, Cip), lambda n: (0, 0)),                 # bn1 shift
            pl.BlockSpec((3 * Cip, Cop), lambda n: (0, 0)),           # conv1 W (fused taps)
            pl.BlockSpec((1, Cop), lambda n: (0, 0)),                 # bn2 scale
            pl.BlockSpec((1, Cop), lambda n: (0, 0)),                 # bn2 shift
            pl.BlockSpec((3 * Cop + Cip, Cop), lambda n: (0, 0)),     # [conv2 W ; downsample W*sd]
            pl.BlockSpec((1, Cop), lambda n: (0, 0)),                 # downsample BN shift
        ],
        out_specs=pl.BlockSpec((TB, L, Cop), lambda n: (n, 0, 0)),
        compiler_params=pltpu.CompilerParams(dimension_semantics=("parallel",)),
    )(xp, s1p, b1p, w1p, s2p, b2p, w2dp, bdp)

    return out[:, :, :Cout] if Cop != Cout else out


def resblock_forward(x_ncl, params, **kwargs):
    """PyTorch Conv1d layout (N, C, L) compatibility wrapper.
    Prefer resblock_forward_nlc in a channels-last model to avoid these two
    full-tensor HBM transposes."""
    out = resblock_forward_nlc(jnp.transpose(x_ncl, (0, 2, 1)), params, **kwargs)
    return jnp.transpose(out, (0, 2, 1))


def fold_bn(gamma, beta, mean, var, eps=1e-5):
    scale = gamma / jnp.sqrt(var + eps)
    shift = beta - mean * scale
    return scale[None, :].astype(jnp.float32), shift[None, :].astype(jnp.float32)


def ref_forward(x_ncl, params):
    """Pure-JAX reference mirroring the PyTorch forward (inference-mode BN)."""
    s1, b1, w1, s2, b2, w2, wd, sd, bd = params
    x = jnp.transpose(x_ncl, (0, 2, 1))    # (N, L, Cin)
    Lr = x.shape[1]

    def conv3(h, w):
        hp = jnp.pad(h, ((0, 0), (1, 1), (0, 0)))
        return sum(jnp.einsum('nlc,cd->nld', hp[:, k:k + Lr], w[k]) for k in range(3))

    h = jnp.maximum(x * s1 + b1, 0.0)
    y = conv3(h, w1)
    h2 = jnp.maximum(y * s2 + b2, 0.0)
    z = conv3(h2, w2)
    identity = jnp.einsum('nlc,cd->nld', x, wd) * sd + bd
    return jnp.transpose(z + identity, (0, 2, 1))


if __name__ == "__main__":
    N, Cin, Cout, L = 2, 4, 8, 16   # in_planes=4, out_planes=8 -> downsample path active
    key = jax.random.PRNGKey(0)
    ks = list(jax.random.split(key, 16))

    x = jax.random.normal(ks[0], (N, Cin, L), dtype=jnp.float32)

    # bn1 (in_planes)
    s1, b1 = fold_bn(1.0 + 0.1 * jax.random.normal(ks[1], (Cin,)),
                     0.1 * jax.random.normal(ks[2], (Cin,)),
                     0.1 * jax.random.normal(ks[3], (Cin,)),
                     jax.random.uniform(ks[4], (Cin,), minval=0.5, maxval=1.5))
    # conv1: torch weight (out, in, 3) -> kernel layout (3, in, out)
    w1 = jnp.transpose(0.2 * jax.random.normal(ks[5], (Cout, Cin, 3), dtype=jnp.float32),
                       (2, 1, 0))
    # bn2 (out_planes)
    s2, b2 = fold_bn(1.0 + 0.1 * jax.random.normal(ks[6], (Cout,)),
                     0.1 * jax.random.normal(ks[7], (Cout,)),
                     0.1 * jax.random.normal(ks[8], (Cout,)),
                     jax.random.uniform(ks[9], (Cout,), minval=0.5, maxval=1.5))
    # conv2: (out, out, 3) -> (3, out, out)
    w2 = jnp.transpose(0.2 * jax.random.normal(ks[10], (Cout, Cout, 3), dtype=jnp.float32),
                       (2, 1, 0))
    # downsample conv 1x1: torch weight (out, in, 1) -> (in, out)
    wd = jnp.transpose(0.2 * jax.random.normal(ks[11], (Cout, Cin, 1), dtype=jnp.float32),
                       (2, 1, 0))[0]
    # downsample bn (out_planes)
    sd, bd = fold_bn(1.0 + 0.1 * jax.random.normal(ks[12], (Cout,)),
                     0.1 * jax.random.normal(ks[13], (Cout,)),
                     0.1 * jax.random.normal(ks[14], (Cout,)),
                     jax.random.uniform(ks[15], (Cout,), minval=0.5, maxval=1.5))

    params = (s1, b1, w1, s2, b2, w2, wd, sd, bd)

    out = resblock_forward(x, params)
    jax.block_until_ready(out)

    ref = ref_forward(x, params)
    assert out.shape == (N, Cout, L)
    assert jnp.allclose(out, ref, atol=1e-4, rtol=1e-4), "kernel mismatch vs reference"

    print("KERNEL_OK")
</pallas_src>

<mosaic_0001>
module attributes {stable_mosaic.version = 11 : i64} {
  func.func @resblock_kernel(%arg0: i32, %arg1: memref<1x16x128xf32, #tpu.memory_space<vmem>>, %arg2: memref<1x128xf32, #tpu.memory_space<vmem>>, %arg3: memref<1x128xf32, #tpu.memory_space<vmem>>, %arg4: memref<384x128xf32, #tpu.memory_space<vmem>>, %arg5: memref<1x128xf32, #tpu.memory_space<vmem>>, %arg6: memref<1x128xf32, #tpu.memory_space<vmem>>, %arg7: memref<512x128xf32, #tpu.memory_space<vmem>>, %arg8: memref<1x128xf32, #tpu.memory_space<vmem>>, %arg9: memref<1x16x128xf32, #tpu.memory_space<vmem>>) attributes {dimension_semantics = [#tpu.dimension_semantics<parallel>], iteration_bounds = array<i64: 2>, scalar_prefetch = 0 : i64, scratch_operands = 0 : i64, tpu.core_type = #tpu.core_type<tc>, window_params = [{transform_indices = @transform_0, window_bounds = array<i64: 1, 16, 128>}, {pipeline_mode = #tpu.pipeline_mode<synchronous>, transform_indices = @transform_1, window_bounds = array<i64: 1, 128>}, {pipeline_mode = #tpu.pipeline_mode<synchronous>, transform_indices = @transform_2, window_bounds = array<i64: 1, 128>}, {pipeline_mode = #tpu.pipeline_mode<synchronous>, transform_indices = @transform_3, window_bounds = array<i64: 384, 128>}, {pipeline_mode = #tpu.pipeline_mode<synchronous>, transform_indices = @transform_4, window_bounds = array<i64: 1, 128>}, {pipeline_mode = #tpu.pipeline_mode<synchronous>, transform_indices = @transform_5, window_bounds = array<i64: 1, 128>}, {pipeline_mode = #tpu.pipeline_mode<synchronous>, transform_indices = @transform_6, window_bounds = array<i64: 512, 128>}, {pipeline_mode = #tpu.pipeline_mode<synchronous>, transform_indices = @transform_7, window_bounds = array<i64: 1, 128>}, {transform_indices = @transform_8, window_bounds = array<i64: 1, 16, 128>}]} {
    %c0 = arith.constant 0 : index
    %c0_0 = arith.constant 0 : index
    %c0_1 = arith.constant 0 : index
    %0 = vector.load %arg1[%c0, %c0_0, %c0_1] : memref<1x16x128xf32, #tpu.memory_space<vmem>>, vector<1x16x128xf32>
    %1 = vector.shape_cast %0 : vector<1x16x128xf32> to vector<16x128xf32>
    %2 = tpu.iota {dimensions = array<i32: 0>} : vector<16x1xi32>
    %c16_i32 = arith.constant 16 : i32
    %c0_i32 = arith.constant 0 : i32
    %3 = arith.cmpi eq, %c16_i32, %c0_i32 : i32
    %c1_i32 = arith.constant 1 : i32
    %4 = arith.select %3, %c1_i32, %c16_i32 : i32
    %5 = vector.broadcast %4 : i32 to vector<16x1xi32>
    %6 = arith.remsi %2, %5 : vector<16x1xi32>
    %c0_i32_2 = arith.constant 0 : i32
    %7 = vector.broadcast %c0_i32_2 : i32 to vector<16x1xi32>
    %8 = arith.cmpi ne, %6, %7 : vector<16x1xi32>
    %c0_i32_3 = arith.constant 0 : i32
    %9 = vector.broadcast %c0_i32_3 : i32 to vector<16x1xi32>
    %10 = arith.cmpi slt, %6, %9 : vector<16x1xi32>
    %c0_i32_4 = arith.constant 0 : i32
    %11 = arith.cmpi slt, %4, %c0_i32_4 : i32
    %12 = vector.broadcast %11 : i1 to vector<16x1xi1>
    %13 = vector.broadcast %12 : vector<16x1xi1> to vector<16x1xi1>
    %14 = arith.xori %10, %13 : vector<16x1xi1>
    %15 = arith.andi %14, %8 : vector<16x1xi1>
    %16 = vector.broadcast %4 : i32 to vector<16x1xi32>
    %17 = arith.addi %6, %16 : vector<16x1xi32>
    %18 = arith.select %15, %17, %6 : vector<16x1xi1>, vector<16x1xi32>
    %c0_i32_5 = arith.constant 0 : i32
    %19 = vector.broadcast %c0_i32_5 : i32 to vector<16x1xi32>
    %20 = arith.cmpi sgt, %18, %19 : vector<16x1xi32>
    %c15_i32 = arith.constant 15 : i32
    %21 = vector.broadcast %c15_i32 : i32 to vector<16x1xi32>
    %22 = arith.cmpi slt, %18, %21 : vector<16x1xi32>
    %c0_6 = arith.constant 0 : index
    %c0_7 = arith.constant 0 : index
    %23 = vector.load %arg2[%c0_6, %c0_7] : memref<1x128xf32, #tpu.memory_space<vmem>>, vector<1x128xf32>
    %24 = vector.broadcast %23 : vector<1x128xf32> to vector<16x128xf32>
    %25 = arith.mulf %1, %24 : vector<16x128xf32>
    %c0_8 = arith.constant 0 : index
    %c0_9 = arith.constant 0 : index
    %26 = vector.load %arg3[%c0_8, %c0_9] : memref<1x128xf32, #tpu.memory_space<vmem>>, vector<1x128xf32>
    %27 = vector.broadcast %26 : vector<1x128xf32> to vector<16x128xf32>
    %28 = arith.addf %25, %27 : vector<16x128xf32>
    %cst = arith.constant 0.000000e+00 : f32
    %29 = vector.broadcast %cst : f32 to vector<16x128xf32>
    %30 = arith.maximumf %28, %29 : vector<16x128xf32>
    %c1_i32_10 = arith.constant 1 : i32
    %31 = tpu.dynamic_rotate %30 by %c1_i32_10 dim 0 : vector<16x128xf32>, i32 -> vector<16x128xf32>
    %cst_11 = arith.constant 0.000000e+00 : f32
    %32 = vector.shape_cast %20 : vector<16x1xi1> to vector<16x1xi1>
    %33 = vector.broadcast %32 : vector<16x1xi1> to vector<16x128xi1>
    %34 = vector.broadcast %cst_11 : f32 to vector<16x128xf32>
    %35 = arith.select %33, %31, %34 : vector<16x128xi1>, vector<16x128xf32>
    %c15_i32_12 = arith.constant 15 : i32
    %36 = tpu.dynamic_rotate %30 by %c15_i32_12 dim 0 : vector<16x128xf32>, i32 -> vector<16x128xf32>
    %cst_13 = arith.constant 0.000000e+00 : f32
    %37 = vector.shape_cast %22 : vector<16x1xi1> to vector<16x1xi1>
    %38 = vector.broadcast %37 : vector<16x1xi1> to vector<16x128xi1>
    %39 = vector.broadcast %cst_13 : f32 to vector<16x128xf32>
    %40 = arith.select %38, %36, %39 : vector<16x128xi1>, vector<16x128xf32>
    %41 = tpu.concatenate %35, %30, %40 in 1 : vector<16x128xf32>, vector<16x128xf32>, vector<16x128xf32> -> vector<16x384xf32>
    %c0_14 = arith.constant 0 : index
    %c0_15 = arith.constant 0 : index
    %42 = vector.load %arg4[%c0_14, %c0_15] : memref<384x128xf32, #tpu.memory_space<vmem>>, vector<384x128xf32>
    %cst_16 = arith.constant dense<0.000000e+00> : vector<16x128xf32>
    %43 = tpu.matmul %41, %42, %cst_16 {dimension_numbers = #tpu.dot_dimension_numbers<[1], [0], [0], [1], [0, 0, 1, 1], [], []>} : vector<16x384xf32>, vector<384x128xf32>, vector<16x128xf32> -> vector<16x128xf32>
    %c0_17 = arith.constant 0 : index
    %c0_18 = arith.constant 0 : index
    %44 = vector.load %arg5[%c0_17, %c0_18] : memref<1x128xf32, #tpu.memory_space<vmem>>, vector<1x128xf32>
    %45 = vector.broadcast %44 : vector<1x128xf32> to vector<16x128xf32>
    %46 = arith.mulf %43, %45 : vector<16x128xf32>
    %c0_19 = arith.constant 0 : index
    %c0_20 = arith.constant 0 : index
    %47 = vector.load %arg6[%c0_19, %c0_20] : memref<1x128xf32, #tpu.memory_space<vmem>>, vector<1x128xf32>
    %48 = vector.broadcast %47 : vector<1x128xf32> to vector<16x128xf32>
    %49 = arith.addf %46, %48 : vector<16x128xf32>
    %cst_21 = arith.constant 0.000000e+00 : f32
    %50 = vector.broadcast %cst_21 : f32 to vector<16x128xf32>
    %51 = arith.maximumf %49, %50 : vector<16x128xf32>
    %c1_i32_22 = arith.constant 1 : i32
    %52 = tpu.dynamic_rotate %51 by %c1_i32_22 dim 0 : vector<16x128xf32>, i32 -> vector<16x128xf32>
    %cst_23 = arith.constant 0.000000e+00 : f32
    %53 = vector.shape_cast %20 : vector<16x1xi1> to vector<16x1xi1>
    %54 = vector.broadcast %53 : vector<16x1xi1> to vector<16x128xi1>
    %55 = vector.broadcast %cst_23 : f32 to vector<16x128xf32>
    %56 = arith.select %54, %52, %55 : vector<16x128xi1>, vector<16x128xf32>
    %c15_i32_24 = arith.constant 15 : i32
    %57 = tpu.dynamic_rotate %51 by %c15_i32_24 dim 0 : vector<16x128xf32>, i32 -> vector<16x128xf32>
    %cst_25 = arith.constant 0.000000e+00 : f32
    %58 = vector.shape_cast %22 : vector<16x1xi1> to vector<16x1xi1>
    %59 = vector.broadcast %58 : vector<16x1xi1> to vector<16x128xi1>
    %60 = vector.broadcast %cst_25 : f32 to vector<16x128xf32>
    %61 = arith.select %59, %57, %60 : vector<16x128xi1>, vector<16x128xf32>
    %62 = tpu.concatenate %56, %51, %61 in 1 : vector<16x128xf32>, vector<16x128xf32>, vector<16x128xf32> -> vector<16x384xf32>
    %63 = tpu.concatenate %62, %1 in 1 : vector<16x384xf32>, vector<16x128xf32> -> vector<16x512xf32>
    %c0_26 = arith.constant 0 : index
    %c0_27 = arith.constant 0 : index
    %64 = vector.load %arg7[%c0_26, %c0_27] : memref<512x128xf32, #tpu.memory_space<vmem>>, vector<512x128xf32>
    %cst_28 = arith.constant dense<0.000000e+00> : vector<16x128xf32>
    %65 = tpu.matmul %63, %64, %cst_28 {dimension_numbers = #tpu.dot_dimension_numbers<[1], [0], [0], [1], [0, 0, 1, 1], [], []>} : vector<16x512xf32>, vector<512x128xf32>, vector<16x128xf32> -> vector<16x128xf32>
    %c0_29 = arith.constant 0 : index
    %c0_30 = arith.constant 0 : index
    %66 = vector.load %arg8[%c0_29, %c0_30] : memref<1x128xf32, #tpu.memory_space<vmem>>, vector<1x128xf32>
    %67 = vector.broadcast %66 : vector<1x128xf32> to vector<16x128xf32>
    %68 = arith.addf %65, %67 : vector<16x128xf32>
    %69 = vector.shape_cast %68 : vector<16x128xf32> to vector<1x16x128xf32>
    %c0_31 = arith.constant 0 : index
    %c0_32 = arith.constant 0 : index
    %c0_33 = arith.constant 0 : index
    %70 = vector.load %arg9[%c0_31, %c0_32, %c0_33] : memref<1x16x128xf32, #tpu.memory_space<vmem>>, vector<1x16x128xf32>
    tpu.vector_store %arg9[%c0_31, %c0_32, %c0_33], %69 {strides = array<i32>} : memref<1x16x128xf32, #tpu.memory_space<vmem>>, vector<1x16x128xf32>,
    return
  }
  func.func @transform_0(%arg0: i32) -> (i32, i32, i32) {
    %c0_i32 = arith.constant 0 : i32
    %c0_i32_0 = arith.constant 0 : i32
    %c0_i32_1 = arith.constant 0 : i32
    return %arg0, %c0_i32, %c0_i32_0 : i32, i32, i32
  }
  func.func @transform_1(%arg0: i32) -> (i32, i32) {
    %c0_i32 = arith.constant 0 : i32
    %c0_i32_0 = arith.constant 0 : i32
    %c0_i32_1 = arith.constant 0 : i32
    return %c0_i32, %c0_i32_0 : i32, i32
  }
  func.func @transform_2(%arg0: i32) -> (i32, i32) {
    %c0_i32 = arith.constant 0 : i32
    %c0_i32_0 = arith.constant 0 : i32
    %c0_i32_1 = arith.constant 0 : i32
    return %c0_i32, %c0_i32_0 : i32, i32
  }
  func.func @transform_3(%arg0: i32) -> (i32, i32) {
    %c0_i32 = arith.constant 0 : i32
    %c0_i32_0 = arith.constant 0 : i32
    %c0_i32_1 = arith.constant 0 : i32
    return %c0_i32, %c0_i32_0 : i32, i32
  }
  func.func @transform_4(%arg0: i32) -> (i32, i32) {
    %c0_i32 = arith.constant 0 : i32
    %c0_i32_0 = arith.constant 0 : i32
    %c0_i32_1 = arith.constant 0 : i32
    return %c0_i32, %c0_i32_0 : i32, i32
  }
  func.func @transform_5(%arg0: i32) -> (i32, i32) {
    %c0_i32 = arith.constant 0 : i32
    %c0_i32_0 = arith.constant 0 : i32
    %c0_i32_1 = arith.constant 0 : i32
    return %c0_i32, %c0_i32_0 : i32, i32
  }
  func.func @transform_6(%arg0: i32) -> (i32, i32) {
    %c0_i32 = arith.constant 0 : i32
    %c0_i32_0 = arith.constant 0 : i32
    %c0_i32_1 = arith.constant 0 : i32
    return %c0_i32, %c0_i32_0 : i32, i32
  }
  func.func @transform_7(%arg0: i32) -> (i32, i32) {
    %c0_i32 = arith.constant 0 : i32
    %c0_i32_0 = arith.constant 0 : i32
    %c0_i32_1 = arith.constant 0 : i32
    return %c0_i32, %c0_i32_0 : i32, i32
  }
  func.func @transform_8(%arg0: i32) -> (i32, i32, i32) {
    %c0_i32 = arith.constant 0 : i32
    %c0_i32_0 = arith.constant 0 : i32
    %c0_i32_1 = arith.constant 0 : i32
    return %arg0, %c0_i32, %c0_i32_0 : i32, i32, i32
  }
}

</mosaic_0001>

<bundles_post_ra>
// kernel: tpu_custom_call.1
= control target key start
LH: loop header
LB: loop body
LE: loop exit
PB: predicated region body
PF: predicated region fallthrough
CT: control target
= control target key end

     0   :  { %13 = vsyncpa [#allocation3], 0  ;;  %s1915_s0 = inlined_call_operand.hbm [shape: f32[2,16,128], index: 0, kind: input, shape index: {}]   ;;  %s1916_s1 = inlined_call_operand.vmem [shape: f32[1,128], index: 1, kind: input, shape index: {}]   ;;  %s1917_s2 = inlined_call_operand.vmem [shape: f32[1,128], index: 2, kind: input, shape index: {}]   ;;  %s1918_s3 = inlined_call_operand.hbm [shape: f32[384,128], index: 3, kind: input, shape index: {}]   ;;  %s1919_s4 = inlined_call_operand.vmem [shape: f32[1,128], index: 4, kind: input, shape index: {}]   ;;  %s1920_s5 = inlined_call_operand.vmem [shape: f32[1,128], index: 5, kind: input, shape index: {}]   ;;  %s1921_s6 = inlined_call_operand.hbm [shape: f32[512,128], index: 6, kind: input, shape index: {}]   ;;  %s1922_s7 = inlined_call_operand.vmem [shape: f32[1,128], index: 7, kind: input, shape index: {}]   ;;  %s1923_s8 = inlined_call_operand.hbm [shape: f32[2,16,128], index: 8, kind: output, shape index: {}]  }
   0x1   :  { %15 = vsyncpa [#allocation3 + $0x1], 0 }
   0x2   :  { %16 = vsyncpa [#allocation6], 0 }
   0x3   :  { %17 = vsyncpa [#allocation4], 0 }
   0x4   :  { %19 = vsyncpa [#allocation4 + $0x1], 0  ;;  %s1593_s27 = smov 0   ;;  %s1595_s28 = smov 0  }
   0x5   :  { %s1597_s29 = smov 0   ;;  %s1599_s30 = smov 0  }
   0x6 LB: > { %s1614_s9 = sadd.s32 4294967295, %s1538_s30   ;;  %s987_s10 = sadd.s32 4294967294, %s1538_s30   ;;  %s1538_s30 = sphi %s1599_s30, %s1951_s30   ;;  %s1534_s29 = sphi %s1597_s29, %s1950_s29   ;;  %s1530_s28 = sphi %s1595_s28, %s1949_s28   ;;  %s1526_s27 = sphi %s1593_s27, %s1948_s27  }
   0x7   : > { %p45_p0 = scmp.ne.s32.totalorder %s1530_s28, %s1526_s27  ;;  %p1924_p1 = scmp.eq.s32.totalorder %s1614_s9, 0 }
   0x8   : > { %p222_p3 = scmp.eq.s32.totalorder %s987_s10, 1  ;;  %p988_p5 = scmp.ge.s32.totalorder %s1538_s30, 1 }
   0x9   : > { %p1623_p4 = por %p1924_p1, %p45_p0  ;;  %p229_p7 = scmp.lt.s32.totalorder %s1538_s30, 3 }
   0xa   : > { %p1628_p6 = por %p222_p3, %p45_p0  ;;  %s1540_s14 = smov [#allocation5]  }
   0xb   : > { %s1929_s11 = scalar_select %p1623_p4, 1, 0 }
   0xc   : > { %s1930_s12 = scalar_select %p1628_p6, 1, 0 }
   0xd   : > { %p1633_p8 = pnand %p988_p5, %p229_p7  ;;  %s247_s15 = sshll.u32 %s1540_s14, 4  ;;  %s1637_s15 = int_to_ptr.vmem [resolvable:$true] %s247_s15 }
   0xe   : > { %s1541_s17 = smov [#allocation7]   ;;  %s1382_s21 = scalar_lea.hbm %s1918_s3, 6144 }
   0xf   : > { %p1323_p9 = pneg %p1633_p8  ;;  %s266_s18 = sshll.u32 %s1541_s17, 4  ;;  %s1648_s18 = int_to_ptr.vmem [resolvable:$true] %s266_s18 }
  0x10   : > { %p1383_p12 = scmp.ne.s32.totalorder %s1918_s3, %s1382_s21  ;;  %p1389_p5 = scmp.lt.u32.totalorder %s1382_s21, %s1918_s3 }
  0x11   : > { %p1644_p11 = pnand %p1323_p9, %p1924_p1 }
  0x13   : > { %p1384_p13 = pneg %p1644_p11 }
  0x15   : > { %p1385_p0 = pnand %p1384_p13, %p1383_p12 }
  0x17   : > { %p1386_p3 = pneg %p1385_p0 }
  0x19   : > { %p1391_p7 = pnand %p1389_p5, %p1386_p3 }
  0x1b   : > { %1394 = shalt.err (!%p1391_p7)
}
  0x1c   : > { %s1395_s26 = scalar_lea.vmem %s1637_s15, 6144  ;;  %p1403_p2 = scmp.lt.s32.totalorder %s1637_s15, %s1637_s15 }
  0x1d   : > { %p1396_p9 = scmp.ne.s32.totalorder %s1637_s15, %s1395_s26  ;;  %p1404_p12 = scmp.lt.s32.totalorder %s1395_s26, %s1395_s26 }
  0x1f   : > { %p1398_p10 = pnand %p1396_p9, %p1384_p13  ;;  %p1405_p0 = por %p1404_p12, %p1403_p2 }
  0x21   : > { %p1399_p1 = pneg %p1398_p10 }
  0x23   : > { %p1406_p6 = pnand %p1405_p0, %p1399_p1 }
  0x25   : > { %1409 = shalt.err (!%p1406_p6)
}
  0x26   : > { %s1925_s10 = smov 128   ;;  %s1926_s14 = smov 8  }
  0x27   : > { %1326 = dma.hbm_to_vmem [thread:$0]  (!%p1644_p11), %s1918_s3, 6144, %s1637_s15, [#allocation6], %s1925_s10, %s1925_s10, %s1926_s14  }
  0x28   : > { %s1410_s22 = scalar_lea.hbm %s1921_s6, 8192 }
  0x29   : > { %p1411_p1 = scmp.ne.s32.totalorder %s1921_s6, %s1410_s22  ;;  %p1417_p10 = scmp.lt.u32.totalorder %s1410_s22, %s1921_s6 }
  0x2b   : > { %p1413_p2 = pnand %p1411_p1, %p1384_p13 }
  0x2d   : > { %p1414_p6 = pneg %p1413_p2 }
  0x2f   : > { %p1419_p3 = pnand %p1417_p10, %p1414_p6 }
  0x31   : > { %1422 = shalt.err (!%p1419_p3)
}
  0x32   : > { %s1423_s15 = scalar_lea.vmem %s1648_s18, 8192  ;;  %p1431_p12 = scmp.lt.s32.totalorder %s1648_s18, %s1648_s18 }
  0x33   : > { %p1424_p5 = scmp.ne.s32.totalorder %s1648_s18, %s1423_s15  ;;  %p1432_p0 = scmp.lt.s32.totalorder %s1423_s15, %s1423_s15 }
  0x35   : > { %p1426_p7 = pnand %p1424_p5, %p1384_p13  ;;  %p1433_p1 = por %p1432_p0, %p1431_p12 }
  0x37   : > { %p1427_p9 = pneg %p1426_p7 }
  0x39   : > { %p1434_p2 = pnand %p1433_p1, %p1427_p9 }
  0x3b   : > { %1437 = shalt.err (!%p1434_p2)
}
  0x3c   : > { %1329 = dma.hbm_to_vmem [thread:$0]  (!%p1644_p11), %s1921_s6, 8192, %s1648_s18, [#allocation6], %s1925_s10, %s1925_s10, %s1926_s14  }
  0x3d   : > { %s1709_s16 = sadd.s32 1, %s1538_s30   ;;  %s32_s20 = sadd.s32 1, %s1534_s29 }
  0x3e   : > { %s29_s21 = ssub.s32 %s1538_s30, %s1709_s16  ;;  %p39_p13 = scmp.ne.s32.totalorder %s1534_s29, %s1530_s28 }
  0x3f   : > { %p30_p6 = scmp.eq.s32.totalorder %s29_s21, 0  ;;  %p40_p10 = scmp.eq.s32.totalorder %s1538_s30, 0 }
  0x40   : > { %p1933_p3 = scmp.eq.s32.totalorder %s1614_s9, 1  ;;  %p1340_p7 = scmp.lt.s32.totalorder %s1538_s30, 2 }
  0x41   : > { %s1725_s23 = scalar_select %p30_p6, %s1534_s29, %s32_s20  }
  0x42   : > { %p1719_p5 = por %p1933_p3, %p39_p13  ;;  %p41_p9 = por %p40_p10, %p39_p13 }
  0x43   : > { %s283_s24 = sand.u32 1, %s1534_s29   ;;  %s1014_s18 = sshll.u32 %s1538_s30, 8 }
  0x44   : > { %s1934_s22 = scalar_select %p1719_p5, 1, 0 }
  0x45   : > { %s992_s25 = sshll.u32 %s283_s24, 4  ;;  %s1732_s17 = scalar_lea.hbm %s1915_s0, %s1014_s18 }
  0x46   : > { %s287_s19 = scalar_lea.vmem [#allocation2], %s992_s25  ;;  %p1736_p11 = pnand %p1340_p7, %p41_p9 }
  0x47   : > { %s294_s21 = sshll.u32 %s287_s19, 4  ;;  %s1740_s10 = scalar_lea.sflag [#allocation3], %s283_s24  ;;  %s1734_s21 = int_to_ptr.vmem [resolvable:$true] %s294_s21 }
  0x48   : > { %s1438_s14 = scalar_lea.hbm %s1732_s17, 256  ;;  %p1440_p0 = pneg %p1736_p11 }
  0x49   : > { %p1439_p12 = scmp.ne.s32.totalorder %s1732_s17, %s1438_s14  ;;  %s1443_s26 = scalar_lea.hbm %s1915_s0, 512 }
  0x4a   : > { %p1444_p13 = scmp.lt.u32.totalorder %s1732_s17, %s1915_s0  ;;  %p1445_p6 = scmp.lt.u32.totalorder %s1443_s26, %s1438_s14 }
  0x4b   : > { %p1441_p1 = pnand %p1440_p0, %p1439_p12  ;;  %p1447_p3 = scmp.lt.u32.totalorder %s1438_s14, %s1732_s17 }
  0x4c   : > { %p1446_p10 = por %p1445_p6, %p1444_p13 }
  0x4d   : > { %p1442_p2 = pneg %p1441_p1 }
  0x4e   : > { %p1448_p7 = por %p1447_p3, %p1446_p10 }
  0x50   : > { %p1449_p9 = pnand %p1448_p7, %p1442_p2 }
  0x52   : > { %1452 = shalt.err (!%p1449_p9)
}
  0x53   : > { %s1453_s24 = scalar_lea.vmem %s1734_s21, 256  ;;  %s1544_s25 = smov [#allocation2]  }
  0x54   : > { %p1454_p12 = scmp.ne.s32.totalorder %s1734_s21, %s1453_s24  ;;  %s1458_s18 = sshll.u32 %s1544_s25, 4  ;;  %s1459_s18 = int_to_ptr.vmem [resolvable:$false] %s1458_s18 }
  0x55   : > { %s1460_s15 = scalar_lea.vmem %s1459_s18, 512  ;;  %p1461_p4 = scmp.lt.s32.totalorder %s1734_s21, %s1459_s18 }
  0x56   : > { %p1456_p1 = pnand %p1454_p12, %p1440_p0  ;;  %p1462_p13 = scmp.lt.s32.totalorder %s1460_s15, %s1453_s24 }
  0x58   : > { %p1457_p5 = pneg %p1456_p1  ;;  %p1463_p6 = por %p1462_p13, %p1461_p4 }
  0x5a   : > { %p1464_p10 = pnand %p1463_p6, %p1457_p5 }
  0x5c   : > { %1467 = shalt.err (!%p1464_p10)
}
  0x5d   : > { %s1936_s14 = smov 8   ;;  %s1937_s26 = smov 128  }
  0x5e   : > { %1333 = dma.hbm_to_vmem [thread:$0]  (!%p1736_p11), %s1732_s17, 256, %s1734_s21, %s1740_s10, %s1937_s26, %s1937_s26, %s1936_s14  }
  0x5f   : > { %306 = sbr.rel (%p1633_p8) target bundleno = 609 (0x261), region = 52  ;;  %s1774_s19 = sand.u32 (!%p1633_p8), 1, %s1530_s28  }
  0x60   : > { %s996_s24 = sshll.u32 (!%p1633_p8), %s1774_s19, 4  ;;  %s309_s25 = scalar_lea.sflag (!%p1633_p8), [#allocation3], %s1774_s19 }
  0x61   : > { %s1780_s20 = scalar_lea.vmem (!%p1633_p8), [#allocation2], %s996_s24  ;;  %p1938_p4 = scmp.ne.s32.totalorder (!%p1633_p8), %s1929_s11, 0 }
  0x66   : > { %1513 = dma.done.wait (%p1938_p4), %s309_s25, 256  }
  0x67   : > { %1515 = vsyncadd (%p1938_p4), %s309_s25, 4294967040  ;;  %p1939_p5 = scmp.eq.s32.totalorder %s1614_s9, 0 }
  0x69   : > { %1517 = dma.done.wait (%p1939_p5), [#allocation6], 14336   ;;  %p1940_p8 = pmov %p1939_p5 }
  0x6a   : > { %v444_v0 = vld [vmem:[#allocation5 + $0x80] sm:$0xff]  ;;  %v445_v1 = vld [vmem:[#allocation5 + $0x88] sm:$0xff]  ;;  %v446_v9 = vld [vmem:[#allocation5 + $0x90] sm:$0xff]  ;;  %v355_v52 = vlaneseq  ;;  %s1015_s13 = sshll.u32 %s1614_s9, 8  ;;  %p1945_p0 = scmp.ne.s32.totalorder %s1934_s22, 0 }
  0x6b   : > { %1519 = vsyncadd (%p1940_p8), [#allocation6], 4294952960  ;;  %v428_v2 = vld [vmem:[#allocation5] sm:$0xff]  ;;  %v1183_v3 = vpack.c.bf16 %v445_v1, %v444_v0  ;;  %v429_v4 = vld [vmem:[#allocation5 + $0x8] sm:$0xff]  ;;  %s1871_s21 = scalar_lea.hbm %s1923_s8, %s1015_s13  ;;  %s1545_s9 = smov [#allocation8]  }
  0x6c   : > { %v460_v5 = vld [vmem:[#allocation5 + $0x100] sm:$0xff]  ;;  %v461_v6 = vld [vmem:[#allocation5 + $0x108] sm:$0xff]  ;;  %v1185_v7 = vpack.c.bf16 %v429_v4, %v428_v2  ;;  %v447_v10 = vld [vmem:[#allocation5 + $0x98] sm:$0xff]  ;;  %s1472_s15 = sshll.u32 %s1545_s9, 4  ;;  %s1473_s15 = int_to_ptr.vmem [resolvable:$false] %s1472_s15 }
  0x6d   : > { %v1215_v8 = vpack.c.bf16 %v461_v6, %v460_v5  ;;  %v430_v11 = vld [vmem:[#allocation5 + $0x10] sm:$0xff]  ;;  %1184 = vmatprep.subr.bf16.mxu0 %v1183_v3  ;;  %v1187_v12 = vpack.c.bf16 %v447_v10, %v446_v9  ;;  %v431_v13 = vld [vmem:[#allocation5 + $0x18] sm:$0xff]  ;;  %v448_v18 = vld [vmem:[#allocation5 + $0xa0] sm:$0xff]  ;;  %v1804_v3 = vshrl.u32 %v355_v52, 7  ;;  %s1474_s14 = scalar_lea.vmem %s1473_s15, 512 }
  0x6e   : > { %v462_v14 = vld [vmem:[#allocation5 + $0x110] sm:$0xff]  ;;  %v463_v15 = vld [vmem:[#allocation5 + $0x118] sm:$0xff]  ;;  %1186 = vmatpush3.bf16.msra.mxu0 %v1185_v7  ;;  %v1189_v16 = vpack.c.bf16 %v431_v13, %v430_v11  ;;  %v449_v19 = vld [vmem:[#allocation5 + $0xa8] sm:$0xff] }
  0x6f   : > { %1216 = vmatprep.subr.bf16.mxu1 %v1215_v8  ;;  %v1219_v17 = vpack.c.bf16 %v463_v15, %v462_v14  ;;  %v432_v20 = vld [vmem:[#allocation5 + $0x20] sm:$0xff]  ;;  %1188 = vmatprep.subr.bf16.mxu0 %v1187_v12  ;;  %v1191_v21 = vpack.c.bf16 %v449_v19, %v448_v18  ;;  %v433_v22 = vld [vmem:[#allocation5 + $0x28] sm:$0xff]  ;;  %v450_v26 = vld [vmem:[#allocation5 + $0xb0] sm:$0xff]  ;;  %vm419_vm0 = vcmp.lt.s32.totalorder %v1804_v3, 7  ;;  %vm408_vm1 = vcmp.lt.s32.totalorder %v1804_v3, 1 }
  0x70   : > { %1218 = vmatpush3.bf16.msra.mxu1 %v1215_v8  ;;  %v464_v23 = vld [vmem:[#allocation5 + $0x120] sm:$0xff]  ;;  %v465_v24 = vld [vmem:[#allocation5 + $0x128] sm:$0xff]  ;;  %v451_v27 = vld [vmem:[#allocation5 + $0xb8] sm:$0xff]  ;;  %v1193_v30 = vpack.c.bf16 %v433_v22, %v432_v20 }
  0x71   : > { %1220 = vmatprep.subr.bf16.mxu1 %v1219_v17  ;;  %v1223_v25 = vpack.c.bf16 %v465_v24, %v464_v23  ;;  %v466_v28 = vld [vmem:[#allocation5 + $0x130] sm:$0xff]  ;;  %v467_v29 = vld [vmem:[#allocation5 + $0x138] sm:$0xff]  ;;  %v1195_v31 = vpack.c.bf16 %v451_v27, %v450_v26  ;;  %v452_v35 = vld [vmem:[#allocation5 + $0xc0] sm:$0xff] }
  0x72   : > { %1190 = vmatpush3.bf16.msra.mxu0 %v1189_v16  ;;  %v434_v32 = vld [vmem:[#allocation5 + $0x30] sm:$0xff]  ;;  %v435_v33 = vld [vmem:[#allocation5 + $0x38] sm:$0xff]  ;;  %v1227_v34 = vpack.c.bf16 %v467_v29, %v466_v28  ;;  %v453_v36 = vld [vmem:[#allocation5 + $0xc8] sm:$0xff]  ;;  %v362_v28 = vand.u32 15, %v1804_v3 }
  0x73   : > { %1192 = vmatprep.subr.bf16.mxu0 %v1191_v21  ;;  %v468_v37 = vld [vmem:[#allocation5 + $0x140] sm:$0xff]  ;;  %v469_v38 = vld [vmem:[#allocation5 + $0x148] sm:$0xff]  ;;  %v1197_v39 = vpack.c.bf16 %v435_v33, %v434_v32  ;;  %v1199_v40 = vpack.c.bf16 %v453_v36, %v452_v35  ;;  %v454_v44 = vld [vmem:[#allocation5 + $0xd0] sm:$0xff]  ;;  %v357_v21 = vadd.s32 8, %v1804_v3 }
  0x74   : > { %1222 = vmatpush3.bf16.msra.mxu1 %v1219_v17  ;;  %v436_v41 = vld [vmem:[#allocation5 + $0x40] sm:$0xff]  ;;  %v437_v42 = vld [vmem:[#allocation5 + $0x48] sm:$0xff]  ;;  %v1231_v43 = vpack.c.bf16 %v469_v38, %v468_v37  ;;  %v455_v45 = vld [vmem:[#allocation5 + $0xd8] sm:$0xff]  ;;  %vm1821_vm2 = vcmp.gt.s32.totalorder %v362_v28, 0 }
  0x75   : > { %1224 = vmatprep.subr.bf16.mxu1 %v1223_v25  ;;  %v470_v46 = vld [vmem:[#allocation5 + $0x150] sm:$0xff]  ;;  %v471_v47 = vld [vmem:[#allocation5 + $0x158] sm:$0xff]  ;;  %v1201_v48 = vpack.c.bf16 %v437_v42, %v436_v41  ;;  %v1000_v51 = vld [vmem:[%s1916_s1] ss:$0 sm:$0xff]  ;;  %v1203_v53 = vpack.c.bf16 %v455_v45, %v454_v44 }
  0x76   : > { %1194 = vmatpush3.bf16.msra.mxu0 %v1193_v30  ;;  %v1791_v49 = vld [vmem:[%s1780_s20] sm:$0xff]  ;;  %v1794_v50 = vld [vmem:[%s1780_s20 + $0x8] sm:$0xff]  ;;  %v1235_v59 = vpack.c.bf16 %v471_v47, %v470_v46  ;;  %s352_s20 = scalar_lea.vmem [#allocation8], %s996_s24  ;;  %s882_s24 = scalar_lea.sflag [#allocation4], %s1774_s19 }
  0x77   : > { %1196 = vmatprep.subr.bf16.mxu0 %v1195_v31  ;;  %v438_v54 = vld [vmem:[#allocation5 + $0x50] sm:$0xff]  ;;  %v439_v55 = vld [vmem:[#allocation5 + $0x58] sm:$0xff]  ;;  %v393_v56 = vmul.f32 %v1000_v51, %v1791_v49  ;;  %v394_v57 = vmul.f32 %v1000_v51, %v1794_v50  ;;  %v1001_v58 = vld [vmem:[%s1917_s2] ss:$0 sm:$0xff]  ;;  %v369_v31 = vand.u32 15, %v357_v21  ;;  %s895_s11 = sshll.u32 %s352_s20, 4  ;;  %s1866_s11 = int_to_ptr.vmem [resolvable:$true] %s895_s11 }
  0x78   : > { %1226 = vmatpush3.bf16.msra.mxu1 %v1223_v25  ;;  %v456_v60 = vld [vmem:[#allocation5 + $0xe0] sm:$0xff]  ;;  %v457_v61 = vld [vmem:[#allocation5 + $0xe8] sm:$0xff]  ;;  %v1205_v2 = vpack.c.bf16 %v439_v55, %v438_v54  ;;  %v458_v10 = vld [vmem:[#allocation5 + $0xf0] sm:$0xff]  ;;  %s1468_s18 = scalar_lea.vmem %s1866_s11, 256  ;;  %p1475_p7 = scmp.lt.s32.totalorder %s1866_s11, %s1473_s15 }
  0x79   : > { %1228 = vmatprep.subr.bf16.mxu1 %v1227_v34  ;;  %v472_v62 = vld [vmem:[#allocation5 + $0x160] sm:$0xff]  ;;  %v473_v63 = vld [vmem:[#allocation5 + $0x168] sm:$0xff]  ;;  %v402_v0 = vadd.f32 %v1001_v58, %v393_v56  ;;  %v403_v1 = vadd.f32 %v1001_v58, %v394_v57  ;;  %v1207_v4 = vpack.c.bf16 %v457_v61, %v456_v60  ;;  %v459_v11 = vld [vmem:[#allocation5 + $0xf8] sm:$0xff]  ;;  %vm1827_vm3 = vcmp.lt.s32.totalorder %v369_v31, 15  ;;  %p1469_p11 = scmp.ne.s32.totalorder %s1866_s11, %s1468_s18  ;;  %p1476_p9 = scmp.lt.s32.totalorder %s1474_s14, %s1468_s18 }
  0x7a   : > { %1198 = vmatpush3.bf16.msra.mxu0 %v1197_v39  ;;  %v440_v5 = vld [vmem:[#allocation5 + $0x60] sm:$0xff]  ;;  %v441_v6 = vld [vmem:[#allocation5 + $0x68] sm:$0xff]  ;;  %v1239_v9 = vpack.c.bf16 %v473_v63, %v472_v62  ;;  %v474_v12 = vld [vmem:[#allocation5 + $0x170] sm:$0xff]  ;;  %v1211_v17 = vpack.c.bf16 %v459_v11, %v458_v10 }
  0x7b   : > { %1200 = vmatprep.subr.bf16.mxu0 %v1199_v40  ;;  %v1806_v7 = vmax.f32 %v402_v0, 0.0  ;;  %v1808_v8 = vmax.f32 %v403_v1, 0.0  ;;  %v475_v13 = vld [vmem:[#allocation5 + $0x178] sm:$0xff]  ;;  %v1209_v16 = vpack.c.bf16 %v441_v6, %v440_v5  ;;  %v442_v18 = vld [vmem:[#allocation5 + $0x70] sm:$0xff]  ;;  %v674_v23 = vld [vmem:[#allocation7 + $0x80] sm:$0xff]  ;;  %p1470_p2 = pnand %p1469_p11, %p1945_p0  ;;  %p1477_p12 = por %p1476_p9, %p1475_p7 }
  0x7c   : > { %1230 = vmatpush3.bf16.msra.mxu1 %v1227_v34  ;;  %v443_v19 = vld [vmem:[#allocation5 + $0x78] sm:$0xff]  ;;  %v1243_v22 = vpack.c.bf16 %v475_v13, %v474_v12  ;;  %v675_v24 = vld [vmem:[#allocation7 + $0x88] sm:$0xff]  ;;  %v706_v25 = vld [vmem:[#allocation7 + $0x180] sm:$0xff] }
  0x7d   : > { %1232 = vmatprep.subr.bf16.mxu1 %v1231_v43  ;;  %540 = vmatprep.mubr.f32.mxu0 %v1806_v7  ;;  %v417_v14 = vrot.slane %v1806_v7, 1  ;;  %v418_v15 = vrot.slane %v1808_v8, 1  ;;  %v707_v26 = vld [vmem:[#allocation7 + $0x188] sm:$0xff]  ;;  %v1213_v27 = vpack.c.bf16 %v443_v19, %v442_v18  ;;  %v406_v29 = vrot.slane %v1806_v7, 7  ;;  %v658_v33 = vld [vmem:[#allocation7] sm:$0xff]  ;;  %v676_v38 = vld [vmem:[#allocation7 + $0x90] sm:$0xff]  ;;  %p1471_p3 = pneg %p1470_p2 }
  0x7e   : > { %1202 = vmatpush3.bf16.msra.mxu0 %v1201_v48  ;;  %v407_v30 = vrot.slane %v1808_v8, 7  ;;  %v1247_v32 = vpack.c.bf16 %v675_v24, %v674_v23  ;;  %v659_v34 = vld [vmem:[#allocation7 + $0x8] sm:$0xff]  ;;  %v1279_v35 = vpack.c.bf16 %v707_v26, %v706_v25  ;;  %v690_v36 = vld [vmem:[#allocation7 + $0x100] sm:$0xff]  ;;  %v677_v39 = vld [vmem:[#allocation7 + $0x98] sm:$0xff] }
  0x7f   : > { %1204 = vmatprep.subr.bf16.mxu0 %v1203_v53  ;;  %v420_v20 = vsel %vm419_vm0, %v417_v14, %v418_v15  ;;  %v691_v37 = vld [vmem:[#allocation7 + $0x108] sm:$0xff]  ;;  %v708_v40 = vld [vmem:[#allocation7 + $0x190] sm:$0xff]  ;;  %v709_v41 = vld [vmem:[#allocation7 + $0x198] sm:$0xff]  ;;  %v421_v45 = vsel %vm419_vm0, %v418_v15, %v417_v14  ;;  %v1249_v46 = vpack.c.bf16 %v659_v34, %v658_v33  ;;  %v1251_v52 = vpack.c.bf16 %v677_v39, %v676_v38  ;;  %p1478_p1 = pnand %p1477_p12, %p1471_p3 }
  0x80   : > { %1234 = vmatpush3.bf16.msra.mxu1 %v1231_v43  ;;  %1180 = vmatprep.mubr.f32.mxu1 %v420_v20  ;;  %v410_v43 = vsel %vm408_vm1, %v407_v30, %v406_v29  ;;  %v1281_v47 = vpack.c.bf16 %v691_v37, %v690_v36  ;;  %v660_v48 = vld [vmem:[#allocation7 + $0x10] sm:$0xff]  ;;  %v661_v51 = vld [vmem:[#allocation7 + $0x18] sm:$0xff]  ;;  %v1283_v53 = vpack.c.bf16 %v709_v41, %v708_v40  ;;  %v678_v56 = vld [vmem:[#allocation7 + $0xa0] sm:$0xff] }
  0x81   : > { %1236 = vmatprep.subr.bf16.mxu1 %v1235_v59  ;;  %v692_v54 = vld [vmem:[#allocation7 + $0x110] sm:$0xff]  ;;  %v693_v55 = vld [vmem:[#allocation7 + $0x118] sm:$0xff]  ;;  %v679_v57 = vld [vmem:[#allocation7 + $0xa8] sm:$0xff]  ;;  %v409_v60 = vsel %vm408_vm1, %v406_v29, %v407_v30  ;;  %v1253_v61 = vpack.c.bf16 %v661_v51, %v660_v48 }
  0x82   : > { %1206 = vmatpush3.bf16.msra.mxu0 %v1205_v2  ;;  %v710_v58 = vld [vmem:[#allocation7 + $0x1a0] sm:$0xff]  ;;  %v1285_v62 = vpack.c.bf16 %v693_v55, %v692_v54  ;;  %v663_v0 = vld [vmem:[#allocation7 + $0x28] sm:$0xff]  ;;  %v1255_v1 = vpack.c.bf16 %v679_v57, %v678_v56  ;;  %v680_v6 = vld [vmem:[#allocation7 + $0xb0] sm:$0xff] }
  0x83   : > { %1208 = vmatprep.subr.bf16.mxu0 %v1207_v4  ;;  %v662_v63 = vld [vmem:[#allocation7 + $0x20] sm:$0xff]  ;;  %v695_v5 = vld [vmem:[#allocation7 + $0x128] sm:$0xff]  ;;  %v681_v7 = vld [vmem:[#allocation7 + $0xb8] sm:$0xff] }
  0x84   : > { %1238 = vmatpush3.bf16.msra.mxu1 %v1235_v59  ;;  %v711_v59 = vld [vmem:[#allocation7 + $0x1a8] sm:$0xff]  ;;  %v694_v4 = vld [vmem:[#allocation7 + $0x120] sm:$0xff]  ;;  %v1257_v10 = vpack.c.bf16 %v663_v0, %v662_v63  ;;  %v1259_v12 = vpack.c.bf16 %v681_v7, %v680_v6  ;;  %v664_v14 = vld [vmem:[#allocation7 + $0x30] sm:$0xff] }
  0x85   : > { %1240 = vmatprep.subr.bf16.mxu1 %v1239_v9  ;;  %v1287_v2 = vpack.c.bf16 %v711_v59, %v710_v58  ;;  %v1289_v11 = vpack.c.bf16 %v695_v5, %v694_v4  ;;  %v665_v15 = vld [vmem:[#allocation7 + $0x38] sm:$0xff]  ;;  %v683_v20 = vld [vmem:[#allocation7 + $0xc8] sm:$0xff]  ;;  %v714_v21 = vld [vmem:[#allocation7 + $0x1c0] sm:$0xff] }
  0x86   : > { %1210 = vmatpush3.bf16.msra.mxu0 %v1209_v16  ;;  %v696_v16 = vld [vmem:[#allocation7 + $0x130] sm:$0xff]  ;;  %v697_v18 = vld [vmem:[#allocation7 + $0x138] sm:$0xff]  ;;  %v715_v23 = vld [vmem:[#allocation7 + $0x1c8] sm:$0xff] }
  0x87   : > { %1212 = vmatprep.subr.bf16.mxu0 %v1211_v17  ;;  %v1261_v17 = vpack.c.bf16 %v665_v15, %v664_v14  ;;  %v1293_v19 = vpack.c.bf16 %v697_v18, %v696_v16  ;;  %v666_v24 = vld [vmem:[#allocation7 + $0x40] sm:$0xff]  ;;  %v667_v25 = vld [vmem:[#allocation7 + $0x48] sm:$0xff]  ;;  %v1295_v26 = vpack.c.bf16 %v715_v23, %v714_v21  ;;  %v684_v31 = vld [vmem:[#allocation7 + $0xd0] sm:$0xff] }
  0x88   : > { %1242 = vmatpush3.bf16.msra.mxu1 %v1239_v9  ;;  %v712_v9 = vld [vmem:[#allocation7 + $0x1b0] sm:$0xff]  ;;  %v698_v28 = vld [vmem:[#allocation7 + $0x140] sm:$0xff]  ;;  %v699_v29 = vld [vmem:[#allocation7 + $0x148] sm:$0xff] }
  0x89   : > { %1244 = vmatprep.subr.bf16.mxu1 %v1243_v22  ;;  %v1297_v30 = vpack.c.bf16 %v699_v29, %v698_v28  ;;  %v716_v34 = vld [vmem:[#allocation7 + $0x1d0] sm:$0xff]  ;;  %v669_v38 = vld [vmem:[#allocation7 + $0x58] sm:$0xff]  ;;  %v719_v51 = vld [vmem:[#allocation7 + $0x1e8] sm:$0xff] }
  0x8a   : > { %1214 = vmatpush3.bf16.msra.mxu0 %v1213_v27  ;;  %v1265_v27 = vpack.c.bf16 %v667_v25, %v666_v24  ;;  %v668_v36 = vld [vmem:[#allocation7 + $0x50] sm:$0xff]  ;;  %v701_v40 = vld [vmem:[#allocation7 + $0x158] sm:$0xff]  ;;  %v702_v56 = vld [vmem:[#allocation7 + $0x160] sm:$0xff] }
  0x8b   : > { %1248 = vmatprep.subr.bf16.mxu0 %v1247_v32  ;;  %v685_v32 = vld [vmem:[#allocation7 + $0xd8] sm:$0xff]  ;;  %v700_v39 = vld [vmem:[#allocation7 + $0x150] sm:$0xff]  ;;  %v1269_v41 = vpack.c.bf16 %v669_v38, %v668_v36  ;;  %v703_v57 = vld [vmem:[#allocation7 + $0x168] sm:$0xff] }
  0x8c   : > { %1246 = vmatpush3.bf16.msra.mxu1 %v1243_v22  ;;  %v1267_v33 = vpack.c.bf16 %v685_v32, %v684_v31  ;;  %v1305_v58 = vpack.c.bf16 %v703_v57, %v702_v56  ;;  %v688_v59 = vld [vmem:[#allocation7 + $0xf0] sm:$0xff]  ;;  %v721_v63 = vld [vmem:[#allocation7 + $0x1f8] sm:$0xff]  ;;  %v1006_v3 = vld [vmem:[%s1922_s7] ss:$0 sm:$0xff] }
  0x8d   : > { %1280 = vmatprep.subr.bf16.mxu1 %v1279_v35  ;;  %1002 = vmatmul.mubr.msk.f32.vlgmr.msra.gmra.mrb[0].mxu0 %vm1821_vm2, %v410_v43  ;;  %v717_v35 = vld [vmem:[#allocation7 + $0x1d8] sm:$0xff]  ;;  %v1301_v43 = vpack.c.bf16 %v701_v40, %v700_v39  ;;  %v672_v0 = vld [vmem:[#allocation7 + $0x70] sm:$0xff] }
  0x8e   : > { %545 = vmatprep.mubr.f32.mxu0 %v1808_v8  ;;  %1250 = vmatpush3.bf16.msra.mxu0 %v1249_v46  ;;  %v713_v8 = vld [vmem:[#allocation7 + $0x1b8] sm:$0xff]  ;;  %v1299_v37 = vpack.c.bf16 %v717_v35, %v716_v34  ;;  %v687_v46 = vld [vmem:[#allocation7 + $0xe8] sm:$0xff]  ;;  %v704_v5 = vld [vmem:[#allocation7 + $0x170] sm:$0xff] }
  0x8f   : > { %1181 = vmatmul.mubr.msk.f32.vlgmr.msra.gmra.mrb[0].mxu1 %vm1827_vm3, %v421_v45  ;;  %1252 = vmatprep.subr.bf16.mxu0 %v1251_v52  ;;  %v1291_v13 = vpack.c.bf16 %v713_v8, %v712_v9  ;;  %v686_v45 = vld [vmem:[#allocation7 + $0xe0] sm:$0xff]  ;;  %v705_v6 = vld [vmem:[#allocation7 + $0x178] sm:$0xff] }
  0x90   : > { %1282 = vmatpush3.bf16.msra.mxu1 %v1281_v47  ;;  %868 = vmatprep.mubr.f32.mxu1 %v1791_v49  ;;  %v682_v49 = vld [vmem:[#allocation7 + $0xc0] sm:$0xff]  ;;  %v1271_v48 = vpack.c.bf16 %v687_v46, %v686_v45  ;;  %v1309_v7 = vpack.c.bf16 %v705_v6, %v704_v5 }
  0x91   : > { %1284 = vmatprep.subr.bf16.mxu1 %v1283_v53  ;;  %546 = vmatmul.mubr.f32.gmra.mrb[2].mxu0 %v409_v60  ;;  %v1263_v22 = vpack.c.bf16 %v683_v20, %v682_v49  ;;  %v718_v47 = vld [vmem:[#allocation7 + $0x1e0] sm:$0xff]  ;;  %v671_v53 = vld [vmem:[#allocation7 + $0x68] sm:$0xff]  ;;  %v689_v60 = vld [vmem:[#allocation7 + $0xf8] sm:$0xff] }
  0x92   : > { %1254 = vmatpush3.bf16.msra.mxu0 %v1253_v61  ;;  %v670_v52 = vld [vmem:[#allocation7 + $0x60] sm:$0xff]  ;;  %v1303_v54 = vpack.c.bf16 %v719_v51, %v718_v47  ;;  %v720_v61 = vld [vmem:[#allocation7 + $0x1f0] sm:$0xff] }
  0x93   : > { %1256 = vmatprep.subr.bf16.mxu0 %v1255_v1  ;;  %v1273_v55 = vpack.c.bf16 %v671_v53, %v670_v52  ;;  %v673_v1 = vld [vmem:[#allocation7 + $0x78] sm:$0xff] }
  0x94   : > { %1286 = vmatpush3.bf16.msra.mxu1 %v1285_v62  ;;  %v1275_v62 = vpack.c.bf16 %v689_v60, %v688_v59  ;;  %v1277_v4 = vpack.c.bf16 %v673_v1, %v672_v0 }
  0x95   : > { %1288 = vmatprep.subr.bf16.mxu1 %v1287_v2  ;;  %v1307_v2 = vpack.c.bf16 %v721_v63, %v720_v61 }
  0x96   : > { %1258 = vmatpush3.bf16.msra.mxu0 %v1257_v10 }
  0x97   : > { %1260 = vmatprep.subr.bf16.mxu0 %v1259_v12 }
  0x98   : > { %1290 = vmatpush3.bf16.msra.mxu1 %v1289_v11 }
  0x99   : > { %1292 = vmatprep.subr.bf16.mxu1 %v1291_v13  ;;  %v1004_v13 = vld [vmem:[%s1919_s4] ss:$0 sm:$0xff] }
  0x9a   : > { %1262 = vmatpush3.bf16.msra.mxu0 %v1261_v17  ;;  %v1005_v17 = vld [vmem:[%s1920_s5] ss:$0 sm:$0xff] }
  0x9b   : > { %1264 = vmatprep.subr.bf16.mxu0 %v1263_v22 }
  0x9c   : > { %1294 = vmatpush3.bf16.msra.mxu1 %v1293_v19 }
  0x9d   : > { %1296 = vmatprep.subr.bf16.mxu1 %v1295_v26 }
  0x9e   : > { %1266 = vmatpush3.bf16.msra.mxu0 %v1265_v27 }
  0x9f   : > { %1268 = vmatprep.subr.bf16.mxu0 %v1267_v33 }
  0xa0   : > { %1298 = vmatpush3.bf16.msra.mxu1 %v1297_v30 }
  0xa1   : > { %1300 = vmatprep.subr.bf16.mxu1 %v1299_v37 }
  0xa2   : > { %1270 = vmatpush3.bf16.msra.mxu0 %v1269_v41 }
  0xa3   : > { %1272 = vmatprep.subr.bf16.mxu0 %v1271_v48 }
  0xa4   : > { %1302 = vmatpush3.bf16.msra.mxu1 %v1301_v43 }
  0xa5   : > { %1304 = vmatprep.subr.bf16.mxu1 %v1303_v54 }
  0xa6   : > { %1274 = vmatpush3.bf16.msra.mxu0 %v1273_v55 }
  0xa7   : > { %1276 = vmatprep.subr.bf16.mxu0 %v1275_v62 }
  0xa8   : > { %1306 = vmatpush3.bf16.msra.mxu1 %v1305_v58 }
  0xa9   : > { %1308 = vmatprep.subr.bf16.mxu1 %v1307_v2 }
  0xaa   : > { %1278 = vmatpush3.bf16.msra.mxu0 %v1277_v4 }
  0xac   : > { %1310 = vmatpush3.bf16.msra.mxu1 %v1309_v7 }
 0x160   : > { %v1048_v9 = vpop.f32.mrb[0].mxu0 }
 0x161   : > { %v1049_v8 = vpop.f32.mrb[1].mxu0 }
 0x162   : > { %v1182_v10 = vpop.f32.mrb[0].mxu1  ;;  %v1050_v11 = vadd.f32 %v1049_v8, %v1048_v9 }
 0x163   : > { %v617_v12 = vpop.f32.mrb[1].mxu1 }
 0x164   : > { %v618_v14 = vadd.f32 %v1050_v11, %v617_v12  ;;  %v1051_v15 = vpop.f32.mrb[2].mxu0 }
 0x165   : > { %v1052_v16 = vpop.f32.mrb[3].mxu0 }
 0x166   : > { %v633_v18 = vmul.f32 %v1004_v13, %v618_v14  ;;  %v1053_v19 = vadd.f32 %v1052_v16, %v1051_v15 }
 0x168   : > { %v623_v49 = vadd.f32 %v1182_v10, %v1053_v19  ;;  %v642_v20 = vadd.f32 %v1005_v17, %v633_v18 }
 0x16a   : > { %v634_v21 = vmul.f32 %v1004_v13, %v623_v49  ;;  %v644_v22 = vmax.f32 %v642_v20, 0.0 }
 0x16c   : > { %v643_v23 = vadd.f32 %v1005_v17, %v634_v21  ;;  %793 = vmatprep.mubr.f32.mxu0 %v644_v22  ;;  %v646_v25 = vrot.slane %v644_v22, 7  ;;  %v652_v27 = vrot.slane %v644_v22, 1 }
 0x16e   : > { %v645_v24 = vmax.f32 %v643_v23, 0.0 }
 0x170   : > { %v647_v26 = vrot.slane %v645_v24, 7  ;;  %v653_v28 = vrot.slane %v645_v24, 1 }
 0x172   : > { %v649_v29 = vsel %vm408_vm1, %v647_v26, %v646_v25  ;;  %v654_v30 = vsel %vm419_vm0, %v652_v27, %v653_v28  ;;  %v648_v31 = vsel %vm408_vm1, %v646_v25, %v647_v26  ;;  %v655_v32 = vsel %vm419_vm0, %v653_v28, %v652_v27 }
 0x173   : > { %1007 = vmatmul.mubr.msk.f32.vlgmr.msra.gmra.mrb[4].mxu0 %vm1821_vm2, %v649_v29  ;;  %869 = vmatmul.mubr.f32.vlgmr.msra.gmra.mrb[2].mxu1 %v654_v30 }
 0x174   : > { %798 = vmatprep.mubr.f32.mxu0 %v645_v24  ;;  %873 = vmatprep.mubr.f32.mxu1 %v1794_v50 }
 0x177   : > { %799 = vmatmul.mubr.f32.gmra.mrb[6].mxu0 %v648_v31  ;;  %1008 = vmatmul.mubr.msk.f32.gmra.mrb[4].mxu1 %vm1827_vm3, %v655_v32 }
 0x246   : > { %v1104_v33 = vpop.f32.mrb[4].mxu0  ;;  %v1142_v34 = vpop.f32.mrb[2].mxu1 }
 0x247   : > { %v1105_v35 = vpop.f32.mrb[5].mxu0  ;;  %v1143_v36 = vpop.f32.mrb[3].mxu1 }
 0x248   : > { %v1106_v42 = vadd.f32 %v1105_v35, %v1104_v33  ;;  %v1144_v37 = vadd.f32 %v1143_v36, %v1142_v34 }
 0x24a   : > { %v796_v38 = vadd.f32 %v1106_v42, %v1006_v3  ;;  %v1107_v39 = vpop.f32.mrb[6].mxu0  ;;  %v1145_v40 = vpop.f32.mrb[4].mxu1 }
 0x24b   : > { %v1108_v50 = vpop.f32.mrb[7].mxu0  ;;  %v1146_v44 = vpop.f32.mrb[5].mxu1 }
 0x24c   : > { %v871_v41 = vadd.f32 %v1144_v37, %v796_v38  ;;  %v1109_v43 = vadd.f32 %v1108_v50, %v1107_v39  ;;  %v1147_v45 = vadd.f32 %v1146_v44, %v1145_v40 }
 0x24e   : > { %879 = vst [vmem:[%s352_s20] sm:$0xff] %v871_v41  ;;  %v801_v46 = vadd.f32 %v1109_v43, %v1006_v3 }
 0x250   : > { %v876_v47 = vadd.f32 %v1147_v45, %v801_v46 }
 0x252   : > { %880 = vst [vmem:[%s352_s20 + $0x8] sm:$0xff] %v876_v47 }
 0x253   : > { %1481 = shalt.err (!%p1478_p1)
}
 0x254   : > { %s1482_s26 = scalar_lea.hbm %s1871_s21, 256  ;;  %s1486_s13 = scalar_lea.hbm %s1923_s8, 512 }
 0x255   : > { %p1483_p13 = scmp.ne.s32.totalorder %s1871_s21, %s1482_s26  ;;  %p1487_p4 = scmp.lt.u32.totalorder %s1871_s21, %s1923_s8 }
 0x256   : > { %p1488_p5 = scmp.lt.u32.totalorder %s1486_s13, %s1482_s26  ;;  %p1490_p11 = scmp.lt.u32.totalorder %s1482_s26, %s1871_s21 }
 0x257   : > { %p1484_p6 = pnand %p1483_p13, %p1945_p0 }
 0x258   : > { %p1489_p8 = por %p1488_p5, %p1487_p4 }
 0x259   : > { %p1485_p10 = pneg %p1484_p6 }
 0x25a   : > { %p1491_p2 = por %p1490_p11, %p1489_p8 }
 0x25c   : > { %p1492_p3 = pnand %p1491_p2, %p1485_p10 }
 0x25e   : > { %1495 = shalt.err (!%p1492_p3)
}
 0x25f   : > { %s1546_s18 = smov 128   ;;  %s1547_s9 = smov 8  }
 0x260   : > { %1321 = dma.vmem_to_hbm [thread:$0]  (%p1945_p0), %s1866_s11, 256, %s1871_s21, %s882_s24, %s1546_s18, %s1546_s18, %s1547_s9  }
 0x261 PF: > { %s910_s15 = sand.u32 1, %s1526_s27   ;;  %p1946_p7 = scmp.ne.s32.totalorder %s1930_s12, 0 }
 0x262   : > { %p1947_p9 = scmp.ge.s32.totalorder %s1538_s30, 2  ;;  %s911_s14 = scalar_lea.sflag [#allocation4], %s910_s15 }
 0x264   : > { %p1335_p12 = pnand %p1947_p9, %p1946_p7 }
 0x266   : > { %1521 = dma.done.wait (!%p1335_p12), %s911_s14, 256  }
 0x267   : > { %1523 = vsyncadd (!%p1335_p12), %s911_s14, 4294967040  ;;  %p22_p1 = scmp.ge.s32.totalorder %s1709_s16, 4   ;;  %s1948_s27 = smov %s1530_s28 }
 0x268   : > { %s1949_s28 = smov %s1534_s29  ;;  %s1950_s29 = smov %s1725_s23 }
 0x269   : > { %s1951_s30 = smov %s1709_s16  ;;  %24 = sbr.rel (!%p22_p1) target bundleno = 6 (0x6), region = 105 }
 0x270   :  { %916 = vsyncpa [#allocation3], 1 }
 0x271   :  { %918 = vsyncpa [#allocation3 + $0x1], 1 }
 0x272   :  { %919 = vsyncpa [#allocation6], 1 }
 0x273   :  { %920 = vsyncpa [#allocation4], 1 }
 0x274   :  { %922 = vsyncpa [#allocation4 + $0x1], 1 }

</bundles_post_ra>
